<compile_context>
chip_gen: v5e
topology: v5e:2x2
jax: 0.10.0
libtpu: 0.0.40
codegen_flags: <defaults>
</compile_context>

<pallas_src>
import numpy as np

import jax
import jax.numpy as jnp
from jax import lax
from jax.experimental import pallas as pl
from jax.experimental.pallas import tpu as pltpu

HEAD_SIZES = (3, 3, 2, 3, 3, 3, 3)
NOUT = sum(HEAD_SIZES)  # 20


def _segment_matrix():
    """Block-diagonal ones (NOUT, NOUT): seg[j,k]=1 iff columns j,k are in the same head."""
    m = np.zeros((NOUT, NOUT), dtype=np.float32)
    off = 0
    for n in HEAD_SIZES:
        m[off:off + n, off:off + n] = 1.0
        off += n
    return jnp.asarray(m)


_SEG_MAT = _segment_matrix()


def _lstm_heads_kernel(x_ref, wih_ref, whh_ref, b_ref, wout_ref, bout_ref,
                       seg_ref, probs_ref, xg_sc, hs_sc):
    T, H = x_ref.shape

    # ---- hoisted input projection: one (T,H)@(H,4H) matmul + bias, staged to
    #      VMEM so per-step rows are cheap vector loads off the serial path. ----
    xg_sc[...] = jnp.dot(x_ref[...], wih_ref[...],
                         preferred_element_type=jnp.float32) + b_ref[...]   # (T, 4H)
    w_hh = whh_ref[...]                                                      # (H, 4H)

    # ---- recurrence, fully unrolled (T static); h/c live in vregs. ----
    h = jnp.zeros((1, H), jnp.float32)
    c = jnp.zeros((1, H), jnp.float32)
    for t in range(T):
        gates = xg_sc[pl.ds(t, 1), :] + jnp.dot(h, w_hh,
                                                preferred_element_type=jnp.float32)  # (1, 4H)
        # PyTorch gate order: i, f, g, o
        i = jax.nn.sigmoid(gates[:, 0:H])
        f = jax.nn.sigmoid(gates[:, H:2 * H])
        g = jnp.tanh(gates[:, 2 * H:3 * H])
        o = jax.nn.sigmoid(gates[:, 3 * H:4 * H])
        c = f * c + i * g
        h = o * jnp.tanh(c)
        hs_sc[pl.ds(t, 1), :] = h        # write-only; not on the recurrence chain

    # dropout (eval mode) is identity; fuse the 7 heads into one matmul.
    hs = hs_sc[...]                                                          # (T, H)
    logits = jnp.dot(hs, wout_ref[...],
                     preferred_element_type=jnp.float32) + bout_ref[...]     # (T, NOUT)

    # ---- fused per-head softmax:
    #   * row-global max shift (a per-row constant is valid for every head),
    #   * single exp over the full (T, NOUT) block,
    #   * per-head denominators via one matmul against a block-diagonal ones
    #     matrix (broadcasts each head's sum back to its own columns),
    #   * exact divide (keeps atol=1e-5), ONE full-block store. ----
    m = jnp.max(logits, axis=-1, keepdims=True)
    e = jnp.exp(logits - m)                                                  # (T, NOUT)
    denom = jnp.dot(e, seg_ref[...], preferred_element_type=jnp.float32)     # (T, NOUT)
    probs_ref[...] = e / denom


@jax.jit
def model_lstm_forward(features, w_ih, w_hh, b_gates, w_out, b_out):
    """features: (T, H) float32. Returns concatenated per-head probs (T, NOUT)."""
    T, H = features.shape
    vmem = pl.BlockSpec(memory_space=pltpu.MemorySpace.VMEM)
    probs = pl.pallas_call(
        _lstm_heads_kernel,
        out_shape=jax.ShapeDtypeStruct((T, NOUT), jnp.float32),
        in_specs=[vmem] * 7,
        out_specs=vmem,
        scratch_shapes=[
            pltpu.VMEM((T, 4 * H), jnp.float32),  # staged input-gate projection
            pltpu.VMEM((T, H), jnp.float32),      # all hidden states (history only)
        ],
    )(features, w_ih, w_hh, b_gates, w_out, b_out, _SEG_MAT)
    return probs


def split_heads(probs_cat):
    out, off = [], 0
    for n in HEAD_SIZES:
        out.append(probs_cat[:, off:off + n])
        off += n
    return out


def _reference(features, w_ih, w_hh, b_gates, w_out, b_out):
    """Pure-JAX reference (mirrors torch.nn.LSTM + heads + softmax)."""
    T, H = features.shape

    def step(carry, x_t):
        h, c = carry
        gates = x_t[None, :] @ w_ih + h @ w_hh + b_gates
        i = jax.nn.sigmoid(gates[:, 0:H])
        f = jax.nn.sigmoid(gates[:, H:2 * H])
        g = jnp.tanh(gates[:, 2 * H:3 * H])
        o = jax.nn.sigmoid(gates[:, 3 * H:4 * H])
        c = f * c + i * g
        h = o * jnp.tanh(c)
        return (h, c), h[0]

    (h0, c0) = (jnp.zeros((1, H)), jnp.zeros((1, H)))
    _, hs = lax.scan(step, (h0, c0), features)
    logits = hs @ w_out + b_out
    probs = []
    off = 0
    for n in HEAD_SIZES:
        probs.append(jax.nn.softmax(logits[:, off:off + n], axis=-1))
        off += n
    return jnp.concatenate(probs, axis=-1)


if __name__ == "__main__":
    T, H = 8, 32  # seq=8, hidden=32

    key = jax.random.PRNGKey(0)
    ks = jax.random.split(key, 8)
    bound = 1.0 / jnp.sqrt(H)  # PyTorch LSTM/Linear init range

    features = jax.random.normal(ks[0], (T, H), dtype=jnp.float32)

    # LSTM params (stored transposed so kernel does x @ W): W_ih: (H, 4H), W_hh: (H, 4H)
    w_ih = jax.random.uniform(ks[1], (H, 4 * H), minval=-bound, maxval=bound, dtype=jnp.float32)
    w_hh = jax.random.uniform(ks[2], (H, 4 * H), minval=-bound, maxval=bound, dtype=jnp.float32)
    b_ih = jax.random.uniform(ks[3], (1, 4 * H), minval=-bound, maxval=bound, dtype=jnp.float32)
    b_hh = jax.random.uniform(ks[4], (1, 4 * H), minval=-bound, maxval=bound, dtype=jnp.float32)
    b_gates = b_ih + b_hh

    # 7 Linear heads fused into one (H, NOUT) weight / (1, NOUT) bias
    w_out = jax.random.uniform(ks[5], (H, NOUT), minval=-bound, maxval=bound, dtype=jnp.float32)
    b_out = jax.random.uniform(ks[6], (1, NOUT), minval=-bound, maxval=bound, dtype=jnp.float32)

    probs_cat = model_lstm_forward(features, w_ih, w_hh, b_gates, w_out, b_out)
    probs_cat = jax.block_until_ready(probs_cat)

    ref = _reference(features, w_ih, w_hh, b_gates, w_out, b_out)
    assert jnp.allclose(probs_cat, ref, atol=1e-5, rtol=1e-5), "mismatch vs JAX reference"

    prob_list = split_heads(probs_cat)  # list of 7 arrays, shapes (T, n_i)
    assert [p.shape for p in prob_list] == [(T, n) for n in HEAD_SIZES]

    print("KERNEL_OK")
</pallas_src>

<mosaic_0001>
module attributes {stable_mosaic.version = 11 : i64} {
  func.func @_lstm_heads_kernel(%arg0: memref<8x32xf32, #tpu.memory_space<vmem>>, %arg1: memref<32x128xf32, #tpu.memory_space<vmem>>, %arg2: memref<32x128xf32, #tpu.memory_space<vmem>>, %arg3: memref<1x128xf32, #tpu.memory_space<vmem>>, %arg4: memref<32x20xf32, #tpu.memory_space<vmem>>, %arg5: memref<1x20xf32, #tpu.memory_space<vmem>>, %arg6: memref<20x20xf32, #tpu.memory_space<vmem>>, %arg7: memref<8x20xf32, #tpu.memory_space<vmem>>, %arg8: memref<8x128xf32, #tpu.memory_space<vmem>>, %arg9: memref<8x32xf32, #tpu.memory_space<vmem>>) attributes {dimension_semantics = [], scalar_prefetch = 0 : i64, scratch_operands = 2 : i64, tpu.core_type = #tpu.core_type<tc>} {
    %c0 = arith.constant 0 : index
    %c0_0 = arith.constant 0 : index
    %0 = vector.load %arg0[%c0, %c0_0] : memref<8x32xf32, #tpu.memory_space<vmem>>, vector<8x32xf32>
    %c0_1 = arith.constant 0 : index
    %c0_2 = arith.constant 0 : index
    %1 = vector.load %arg1[%c0_1, %c0_2] : memref<32x128xf32, #tpu.memory_space<vmem>>, vector<32x128xf32>
    %cst = arith.constant dense<0.000000e+00> : vector<8x128xf32>
    %2 = tpu.matmul %0, %1, %cst {dimension_numbers = #tpu.dot_dimension_numbers<[1], [0], [0], [1], [0, 0, 1, 1], [], []>} : vector<8x32xf32>, vector<32x128xf32>, vector<8x128xf32> -> vector<8x128xf32>
    %c0_3 = arith.constant 0 : index
    %c0_4 = arith.constant 0 : index
    %3 = vector.load %arg3[%c0_3, %c0_4] : memref<1x128xf32, #tpu.memory_space<vmem>>, vector<1x128xf32>
    %4 = vector.broadcast %3 : vector<1x128xf32> to vector<8x128xf32>
    %5 = arith.addf %2, %4 : vector<8x128xf32>
    %c0_5 = arith.constant 0 : index
    %c0_6 = arith.constant 0 : index
    %6 = vector.load %arg8[%c0_5, %c0_6] : memref<8x128xf32, #tpu.memory_space<vmem>>, vector<8x128xf32>
    tpu.vector_store %arg8[%c0_5, %c0_6], %5 {strides = array<i32>} : memref<8x128xf32, #tpu.memory_space<vmem>>, vector<8x128xf32>,
    %c0_7 = arith.constant 0 : index
    %c0_8 = arith.constant 0 : index
    %7 = vector.load %arg2[%c0_7, %c0_8] : memref<32x128xf32, #tpu.memory_space<vmem>>, vector<32x128xf32>
    %cst_9 = arith.constant 0.000000e+00 : f32
    %8 = vector.broadcast %cst_9 : f32 to vector<1x32xf32>
    %cst_10 = arith.constant 0.000000e+00 : f32
    %9 = vector.broadcast %cst_10 : f32 to vector<1x32xf32>
    %c0_11 = arith.constant 0 : index
    %c0_12 = arith.constant 0 : index
    %10 = vector.load %arg8[%c0_11, %c0_12] : memref<8x128xf32, #tpu.memory_space<vmem>>, vector<1x128xf32>
    %cst_13 = arith.constant dense<0.000000e+00> : vector<1x128xf32>
    %11 = tpu.matmul %8, %7, %cst_13 {dimension_numbers = #tpu.dot_dimension_numbers<[1], [0], [0], [1], [0, 0, 1, 1], [], []>} : vector<1x32xf32>, vector<32x128xf32>, vector<1x128xf32> -> vector<1x128xf32>
    %12 = arith.addf %10, %11 : vector<1x128xf32>
    %13 = vector.extract_strided_slice %12 {offsets = [0, 0], sizes = [1, 32], strides = [1, 1]} : vector<1x128xf32> to vector<1x32xf32>
    %14 = arith.negf %13 : vector<1x32xf32>
    %15 = math.exp %14 : vector<1x32xf32>
    %cst_14 = arith.constant 1.000000e+00 : f32
    %16 = vector.broadcast %cst_14 : f32 to vector<1x32xf32>
    %17 = arith.addf %16, %15 : vector<1x32xf32>
    %18 = arith.divf %16, %17 : vector<1x32xf32>
    %19 = vector.extract_strided_slice %12 {offsets = [0, 32], sizes = [1, 32], strides = [1, 1]} : vector<1x128xf32> to vector<1x32xf32>
    %20 = arith.negf %19 : vector<1x32xf32>
    %21 = math.exp %20 : vector<1x32xf32>
    %cst_15 = arith.constant 1.000000e+00 : f32
    %22 = vector.broadcast %cst_15 : f32 to vector<1x32xf32>
    %23 = arith.addf %22, %21 : vector<1x32xf32>
    %24 = arith.divf %22, %23 : vector<1x32xf32>
    %25 = vector.extract_strided_slice %12 {offsets = [0, 64], sizes = [1, 32], strides = [1, 1]} : vector<1x128xf32> to vector<1x32xf32>
    %26 = math.tanh %25 : vector<1x32xf32>
    %27 = vector.extract_strided_slice %12 {offsets = [0, 96], sizes = [1, 32], strides = [1, 1]} : vector<1x128xf32> to vector<1x32xf32>
    %28 = arith.negf %27 : vector<1x32xf32>
    %29 = math.exp %28 : vector<1x32xf32>
    %cst_16 = arith.constant 1.000000e+00 : f32
    %30 = vector.broadcast %cst_16 : f32 to vector<1x32xf32>
    %31 = arith.addf %30, %29 : vector<1x32xf32>
    %32 = arith.divf %30, %31 : vector<1x32xf32>
    %33 = arith.mulf %24, %9 : vector<1x32xf32>
    %34 = arith.mulf %18, %26 : vector<1x32xf32>
    %35 = arith.addf %33, %34 : vector<1x32xf32>
    %36 = math.tanh %35 : vector<1x32xf32>
    %37 = arith.mulf %32, %36 : vector<1x32xf32>
    %c0_17 = arith.constant 0 : index
    %c0_18 = arith.constant 0 : index
    %38 = vector.load %arg9[%c0_17, %c0_18] : memref<8x32xf32, #tpu.memory_space<vmem>>, vector<1x32xf32>
    tpu.vector_store %arg9[%c0_17, %c0_18], %37 {strides = array<i32>} : memref<8x32xf32, #tpu.memory_space<vmem>>, vector<1x32xf32>,
    %c1 = arith.constant 1 : index
    %c0_19 = arith.constant 0 : index
    %39 = vector.load %arg8[%c1, %c0_19] : memref<8x128xf32, #tpu.memory_space<vmem>>, vector<1x128xf32>
    %cst_20 = arith.constant dense<0.000000e+00> : vector<1x128xf32>
    %40 = tpu.matmul %37, %7, %cst_20 {dimension_numbers = #tpu.dot_dimension_numbers<[1], [0], [0], [1], [0, 0, 1, 1], [], []>} : vector<1x32xf32>, vector<32x128xf32>, vector<1x128xf32> -> vector<1x128xf32>
    %41 = arith.addf %39, %40 : vector<1x128xf32>
    %42 = vector.extract_strided_slice %41 {offsets = [0, 0], sizes = [1, 32], strides = [1, 1]} : vector<1x128xf32> to vector<1x32xf32>
    %43 = arith.negf %42 : vector<1x32xf32>
    %44 = math.exp %43 : vector<1x32xf32>
    %cst_21 = arith.constant 1.000000e+00 : f32
    %45 = vector.broadcast %cst_21 : f32 to vector<1x32xf32>
    %46 = arith.addf %45, %44 : vector<1x32xf32>
    %47 = arith.divf %45, %46 : vector<1x32xf32>
    %48 = vector.extract_strided_slice %41 {offsets = [0, 32], sizes = [1, 32], strides = [1, 1]} : vector<1x128xf32> to vector<1x32xf32>
    %49 = arith.negf %48 : vector<1x32xf32>
    %50 = math.exp %49 : vector<1x32xf32>
    %cst_22 = arith.constant 1.000000e+00 : f32
    %51 = vector.broadcast %cst_22 : f32 to vector<1x32xf32>
    %52 = arith.addf %51, %50 : vector<1x32xf32>
    %53 = arith.divf %51, %52 : vector<1x32xf32>
    %54 = vector.extract_strided_slice %41 {offsets = [0, 64], sizes = [1, 32], strides = [1, 1]} : vector<1x128xf32> to vector<1x32xf32>
    %55 = math.tanh %54 : vector<1x32xf32>
    %56 = vector.extract_strided_slice %41 {offsets = [0, 96], sizes = [1, 32], strides = [1, 1]} : vector<1x128xf32> to vector<1x32xf32>
    %57 = arith.negf %56 : vector<1x32xf32>
    %58 = math.exp %57 : vector<1x32xf32>
    %cst_23 = arith.constant 1.000000e+00 : f32
    %59 = vector.broadcast %cst_23 : f32 to vector<1x32xf32>
    %60 = arith.addf %59, %58 : vector<1x32xf32>
    %61 = arith.divf %59, %60 : vector<1x32xf32>
    %62 = arith.mulf %53, %35 : vector<1x32xf32>
    %63 = arith.mulf %47, %55 : vector<1x32xf32>
    %64 = arith.addf %62, %63 : vector<1x32xf32>
    %65 = math.tanh %64 : vector<1x32xf32>
    %66 = arith.mulf %61, %65 : vector<1x32xf32>
    %c1_24 = arith.constant 1 : index
    %c0_25 = arith.constant 0 : index
    %67 = vector.load %arg9[%c1_24, %c0_25] : memref<8x32xf32, #tpu.memory_space<vmem>>, vector<1x32xf32>
    tpu.vector_store %arg9[%c1_24, %c0_25], %66 {strides = array<i32>} : memref<8x32xf32, #tpu.memory_space<vmem>>, vector<1x32xf32>,
    %c2 = arith.constant 2 : index
    %c0_26 = arith.constant 0 : index
    %68 = vector.load %arg8[%c2, %c0_26] : memref<8x128xf32, #tpu.memory_space<vmem>>, vector<1x128xf32>
    %cst_27 = arith.constant dense<0.000000e+00> : vector<1x128xf32>
    %69 = tpu.matmul %66, %7, %cst_27 {dimension_numbers = #tpu.dot_dimension_numbers<[1], [0], [0], [1], [0, 0, 1, 1], [], []>} : vector<1x32xf32>, vector<32x128xf32>, vector<1x128xf32> -> vector<1x128xf32>
    %70 = arith.addf %68, %69 : vector<1x128xf32>
    %71 = vector.extract_strided_slice %70 {offsets = [0, 0], sizes = [1, 32], strides = [1, 1]} : vector<1x128xf32> to vector<1x32xf32>
    %72 = arith.negf %71 : vector<1x32xf32>
    %73 = math.exp %72 : vector<1x32xf32>
    %cst_28 = arith.constant 1.000000e+00 : f32
    %74 = vector.broadcast %cst_28 : f32 to vector<1x32xf32>
    %75 = arith.addf %74, %73 : vector<1x32xf32>
    %76 = arith.divf %74, %75 : vector<1x32xf32>
    %77 = vector.extract_strided_slice %70 {offsets = [0, 32], sizes = [1, 32], strides = [1, 1]} : vector<1x128xf32> to vector<1x32xf32>
    %78 = arith.negf %77 : vector<1x32xf32>
    %79 = math.exp %78 : vector<1x32xf32>
    %cst_29 = arith.constant 1.000000e+00 : f32
    %80 = vector.broadcast %cst_29 : f32 to vector<1x32xf32>
    %81 = arith.addf %80, %79 : vector<1x32xf32>
    %82 = arith.divf %80, %81 : vector<1x32xf32>
    %83 = vector.extract_strided_slice %70 {offsets = [0, 64], sizes = [1, 32], strides = [1, 1]} : vector<1x128xf32> to vector<1x32xf32>
    %84 = math.tanh %83 : vector<1x32xf32>
    %85 = vector.extract_strided_slice %70 {offsets = [0, 96], sizes = [1, 32], strides = [1, 1]} : vector<1x128xf32> to vector<1x32xf32>
    %86 = arith.negf %85 : vector<1x32xf32>
    %87 = math.exp %86 : vector<1x32xf32>
    %cst_30 = arith.constant 1.000000e+00 : f32
    %88 = vector.broadcast %cst_30 : f32 to vector<1x32xf32>
    %89 = arith.addf %88, %87 : vector<1x32xf32>
    %90 = arith.divf %88, %89 : vector<1x32xf32>
    %91 = arith.mulf %82, %64 : vector<1x32xf32>
    %92 = arith.mulf %76, %84 : vector<1x32xf32>
    %93 = arith.addf %91, %92 : vector<1x32xf32>
    %94 = math.tanh %93 : vector<1x32xf32>
    %95 = arith.mulf %90, %94 : vector<1x32xf32>
    %c2_31 = arith.constant 2 : index
    %c0_32 = arith.constant 0 : index
    %96 = vector.load %arg9[%c2_31, %c0_32] : memref<8x32xf32, #tpu.memory_space<vmem>>, vector<1x32xf32>
    tpu.vector_store %arg9[%c2_31, %c0_32], %95 {strides = array<i32>} : memref<8x32xf32, #tpu.memory_space<vmem>>, vector<1x32xf32>,
    %c3 = arith.constant 3 : index
    %c0_33 = arith.constant 0 : index
    %97 = vector.load %arg8[%c3, %c0_33] : memref<8x128xf32, #tpu.memory_space<vmem>>, vector<1x128xf32>
    %cst_34 = arith.constant dense<0.000000e+00> : vector<1x128xf32>
    %98 = tpu.matmul %95, %7, %cst_34 {dimension_numbers = #tpu.dot_dimension_numbers<[1], [0], [0], [1], [0, 0, 1, 1], [], []>} : vector<1x32xf32>, vector<32x128xf32>, vector<1x128xf32> -> vector<1x128xf32>
    %99 = arith.addf %97, %98 : vector<1x128xf32>
    %100 = vector.extract_strided_slice %99 {offsets = [0, 0], sizes = [1, 32], strides = [1, 1]} : vector<1x128xf32> to vector<1x32xf32>
    %101 = arith.negf %100 : vector<1x32xf32>
    %102 = math.exp %101 : vector<1x32xf32>
    %cst_35 = arith.constant 1.000000e+00 : f32
    %103 = vector.broadcast %cst_35 : f32 to vector<1x32xf32>
    %104 = arith.addf %103, %102 : vector<1x32xf32>
    %105 = arith.divf %103, %104 : vector<1x32xf32>
    %106 = vector.extract_strided_slice %99 {offsets = [0, 32], sizes = [1, 32], strides = [1, 1]} : vector<1x128xf32> to vector<1x32xf32>
    %107 = arith.negf %106 : vector<1x32xf32>
    %108 = math.exp %107 : vector<1x32xf32>
    %cst_36 = arith.constant 1.000000e+00 : f32
    %109 = vector.broadcast %cst_36 : f32 to vector<1x32xf32>
    %110 = arith.addf %109, %108 : vector<1x32xf32>
    %111 = arith.divf %109, %110 : vector<1x32xf32>
    %112 = vector.extract_strided_slice %99 {offsets = [0, 64], sizes = [1, 32], strides = [1, 1]} : vector<1x128xf32> to vector<1x32xf32>
    %113 = math.tanh %112 : vector<1x32xf32>
    %114 = vector.extract_strided_slice %99 {offsets = [0, 96], sizes = [1, 32], strides = [1, 1]} : vector<1x128xf32> to vector<1x32xf32>
    %115 = arith.negf %114 : vector<1x32xf32>
    %116 = math.exp %115 : vector<1x32xf32>
    %cst_37 = arith.constant 1.000000e+00 : f32
    %117 = vector.broadcast %cst_37 : f32 to vector<1x32xf32>
    %118 = arith.addf %117, %116 : vector<1x32xf32>
    %119 = arith.divf %117, %118 : vector<1x32xf32>
    %120 = arith.mulf %111, %93 : vector<1x32xf32>
    %121 = arith.mulf %105, %113 : vector<1x32xf32>
    %122 = arith.addf %120, %121 : vector<1x32xf32>
    %123 = math.tanh %122 : vector<1x32xf32>
    %124 = arith.mulf %119, %123 : vector<1x32xf32>
    %c3_38 = arith.constant 3 : index
    %c0_39 = arith.constant 0 : index
    %125 = vector.load %arg9[%c3_38, %c0_39] : memref<8x32xf32, #tpu.memory_space<vmem>>, vector<1x32xf32>
    tpu.vector_store %arg9[%c3_38, %c0_39], %124 {strides = array<i32>} : memref<8x32xf32, #tpu.memory_space<vmem>>, vector<1x32xf32>,
    %c4 = arith.constant 4 : index
    %c0_40 = arith.constant 0 : index
    %126 = vector.load %arg8[%c4, %c0_40] : memref<8x128xf32, #tpu.memory_space<vmem>>, vector<1x128xf32>
    %cst_41 = arith.constant dense<0.000000e+00> : vector<1x128xf32>
    %127 = tpu.matmul %124, %7, %cst_41 {dimension_numbers = #tpu.dot_dimension_numbers<[1], [0], [0], [1], [0, 0, 1, 1], [], []>} : vector<1x32xf32>, vector<32x128xf32>, vector<1x128xf32> -> vector<1x128xf32>
    %128 = arith.addf %126, %127 : vector<1x128xf32>
    %129 = vector.extract_strided_slice %128 {offsets = [0, 0], sizes = [1, 32], strides = [1, 1]} : vector<1x128xf32> to vector<1x32xf32>
    %130 = arith.negf %129 : vector<1x32xf32>
    %131 = math.exp %130 : vector<1x32xf32>
    %cst_42 = arith.constant 1.000000e+00 : f32
    %132 = vector.broadcast %cst_42 : f32 to vector<1x32xf32>
    %133 = arith.addf %132, %131 : vector<1x32xf32>
    %134 = arith.divf %132, %133 : vector<1x32xf32>
    %135 = vector.extract_strided_slice %128 {offsets = [0, 32], sizes = [1, 32], strides = [1, 1]} : vector<1x128xf32> to vector<1x32xf32>
    %136 = arith.negf %135 : vector<1x32xf32>
    %137 = math.exp %136 : vector<1x32xf32>
    %cst_43 = arith.constant 1.000000e+00 : f32
    %138 = vector.broadcast %cst_43 : f32 to vector<1x32xf32>
    %139 = arith.addf %138, %137 : vector<1x32xf32>
    %140 = arith.divf %138, %139 : vector<1x32xf32>
    %141 = vector.extract_strided_slice %128 {offsets = [0, 64], sizes = [1, 32], strides = [1, 1]} : vector<1x128xf32> to vector<1x32xf32>
    %142 = math.tanh %141 : vector<1x32xf32>
    %143 = vector.extract_strided_slice %128 {offsets = [0, 96], sizes = [1, 32], strides = [1, 1]} : vector<1x128xf32> to vector<1x32xf32>
    %144 = arith.negf %143 : vector<1x32xf32>
    %145 = math.exp %144 : vector<1x32xf32>
    %cst_44 = arith.constant 1.000000e+00 : f32
    %146 = vector.broadcast %cst_44 : f32 to vector<1x32xf32>
    %147 = arith.addf %146, %145 : vector<1x32xf32>
    %148 = arith.divf %146, %147 : vector<1x32xf32>
    %149 = arith.mulf %140, %122 : vector<1x32xf32>
    %150 = arith.mulf %134, %142 : vector<1x32xf32>
    %151 = arith.addf %149, %150 : vector<1x32xf32>
    %152 = math.tanh %151 : vector<1x32xf32>
    %153 = arith.mulf %148, %152 : vector<1x32xf32>
    %c4_45 = arith.constant 4 : index
    %c0_46 = arith.constant 0 : index
    %154 = vector.load %arg9[%c4_45, %c0_46] : memref<8x32xf32, #tpu.memory_space<vmem>>, vector<1x32xf32>
    tpu.vector_store %arg9[%c4_45, %c0_46], %153 {strides = array<i32>} : memref<8x32xf32, #tpu.memory_space<vmem>>, vector<1x32xf32>,
    %c5 = arith.constant 5 : index
    %c0_47 = arith.constant 0 : index
    %155 = vector.load %arg8[%c5, %c0_47] : memref<8x128xf32, #tpu.memory_space<vmem>>, vector<1x128xf32>
    %cst_48 = arith.constant dense<0.000000e+00> : vector<1x128xf32>
    %156 = tpu.matmul %153, %7, %cst_48 {dimension_numbers = #tpu.dot_dimension_numbers<[1], [0], [0], [1], [0, 0, 1, 1], [], []>} : vector<1x32xf32>, vector<32x128xf32>, vector<1x128xf32> -> vector<1x128xf32>
    %157 = arith.addf %155, %156 : vector<1x128xf32>
    %158 = vector.extract_strided_slice %157 {offsets = [0, 0], sizes = [1, 32], strides = [1, 1]} : vector<1x128xf32> to vector<1x32xf32>
    %159 = arith.negf %158 : vector<1x32xf32>
    %160 = math.exp %159 : vector<1x32xf32>
    %cst_49 = arith.constant 1.000000e+00 : f32
    %161 = vector.broadcast %cst_49 : f32 to vector<1x32xf32>
    %162 = arith.addf %161, %160 : vector<1x32xf32>
    %163 = arith.divf %161, %162 : vector<1x32xf32>
    %164 = vector.extract_strided_slice %157 {offsets = [0, 32], sizes = [1, 32], strides = [1, 1]} : vector<1x128xf32> to vector<1x32xf32>
    %165 = arith.negf %164 : vector<1x32xf32>
    %166 = math.exp %165 : vector<1x32xf32>
    %cst_50 = arith.constant 1.000000e+00 : f32
    %167 = vector.broadcast %cst_50 : f32 to vector<1x32xf32>
    %168 = arith.addf %167, %166 : vector<1x32xf32>
    %169 = arith.divf %167, %168 : vector<1x32xf32>
    %170 = vector.extract_strided_slice %157 {offsets = [0, 64], sizes = [1, 32], strides = [1, 1]} : vector<1x128xf32> to vector<1x32xf32>
    %171 = math.tanh %170 : vector<1x32xf32>
    %172 = vector.extract_strided_slice %157 {offsets = [0, 96], sizes = [1, 32], strides = [1, 1]} : vector<1x128xf32> to vector<1x32xf32>
    %173 = arith.negf %172 : vector<1x32xf32>
    %174 = math.exp %173 : vector<1x32xf32>
    %cst_51 = arith.constant 1.000000e+00 : f32
    %175 = vector.broadcast %cst_51 : f32 to vector<1x32xf32>
    %176 = arith.addf %175, %174 : vector<1x32xf32>
    %177 = arith.divf %175, %176 : vector<1x32xf32>
    %178 = arith.mulf %169, %151 : vector<1x32xf32>
    %179 = arith.mulf %163, %171 : vector<1x32xf32>
    %180 = arith.addf %178, %179 : vector<1x32xf32>
    %181 = math.tanh %180 : vector<1x32xf32>
    %182 = arith.mulf %177, %181 : vector<1x32xf32>
    %c5_52 = arith.constant 5 : index
    %c0_53 = arith.constant 0 : index
    %183 = vector.load %arg9[%c5_52, %c0_53] : memref<8x32xf32, #tpu.memory_space<vmem>>, vector<1x32xf32>
    tpu.vector_store %arg9[%c5_52, %c0_53], %182 {strides = array<i32>} : memref<8x32xf32, #tpu.memory_space<vmem>>, vector<1x32xf32>,
    %c6 = arith.constant 6 : index
    %c0_54 = arith.constant 0 : index
    %184 = vector.load %arg8[%c6, %c0_54] : memref<8x128xf32, #tpu.memory_space<vmem>>, vector<1x128xf32>
    %cst_55 = arith.constant dense<0.000000e+00> : vector<1x128xf32>
    %185 = tpu.matmul %182, %7, %cst_55 {dimension_numbers = #tpu.dot_dimension_numbers<[1], [0], [0], [1], [0, 0, 1, 1], [], []>} : vector<1x32xf32>, vector<32x128xf32>, vector<1x128xf32> -> vector<1x128xf32>
    %186 = arith.addf %184, %185 : vector<1x128xf32>
    %187 = vector.extract_strided_slice %186 {offsets = [0, 0], sizes = [1, 32], strides = [1, 1]} : vector<1x128xf32> to vector<1x32xf32>
    %188 = arith.negf %187 : vector<1x32xf32>
    %189 = math.exp %188 : vector<1x32xf32>
    %cst_56 = arith.constant 1.000000e+00 : f32
    %190 = vector.broadcast %cst_56 : f32 to vector<1x32xf32>
    %191 = arith.addf %190, %189 : vector<1x32xf32>
    %192 = arith.divf %190, %191 : vector<1x32xf32>
    %193 = vector.extract_strided_slice %186 {offsets = [0, 32], sizes = [1, 32], strides = [1, 1]} : vector<1x128xf32> to vector<1x32xf32>
    %194 = arith.negf %193 : vector<1x32xf32>
    %195 = math.exp %194 : vector<1x32xf32>
    %cst_57 = arith.constant 1.000000e+00 : f32
    %196 = vector.broadcast %cst_57 : f32 to vector<1x32xf32>
    %197 = arith.addf %196, %195 : vector<1x32xf32>
    %198 = arith.divf %196, %197 : vector<1x32xf32>
    %199 = vector.extract_strided_slice %186 {offsets = [0, 64], sizes = [1, 32], strides = [1, 1]} : vector<1x128xf32> to vector<1x32xf32>
    %200 = math.tanh %199 : vector<1x32xf32>
    %201 = vector.extract_strided_slice %186 {offsets = [0, 96], sizes = [1, 32], strides = [1, 1]} : vector<1x128xf32> to vector<1x32xf32>
    %202 = arith.negf %201 : vector<1x32xf32>
    %203 = math.exp %202 : vector<1x32xf32>
    %cst_58 = arith.constant 1.000000e+00 : f32
    %204 = vector.broadcast %cst_58 : f32 to vector<1x32xf32>
    %205 = arith.addf %204, %203 : vector<1x32xf32>
    %206 = arith.divf %204, %205 : vector<1x32xf32>
    %207 = arith.mulf %198, %180 : vector<1x32xf32>
    %208 = arith.mulf %192, %200 : vector<1x32xf32>
    %209 = arith.addf %207, %208 : vector<1x32xf32>
    %210 = math.tanh %209 : vector<1x32xf32>
    %211 = arith.mulf %206, %210 : vector<1x32xf32>
    %c6_59 = arith.constant 6 : index
    %c0_60 = arith.constant 0 : index
    %212 = vector.load %arg9[%c6_59, %c0_60] : memref<8x32xf32, #tpu.memory_space<vmem>>, vector<1x32xf32>
    tpu.vector_store %arg9[%c6_59, %c0_60], %211 {strides = array<i32>} : memref<8x32xf32, #tpu.memory_space<vmem>>, vector<1x32xf32>,
    %c7 = arith.constant 7 : index
    %c0_61 = arith.constant 0 : index
    %213 = vector.load %arg8[%c7, %c0_61] : memref<8x128xf32, #tpu.memory_space<vmem>>, vector<1x128xf32>
    %cst_62 = arith.constant dense<0.000000e+00> : vector<1x128xf32>
    %214 = tpu.matmul %211, %7, %cst_62 {dimension_numbers = #tpu.dot_dimension_numbers<[1], [0], [0], [1], [0, 0, 1, 1], [], []>} : vector<1x32xf32>, vector<32x128xf32>, vector<1x128xf32> -> vector<1x128xf32>
    %215 = arith.addf %213, %214 : vector<1x128xf32>
    %216 = vector.extract_strided_slice %215 {offsets = [0, 0], sizes = [1, 32], strides = [1, 1]} : vector<1x128xf32> to vector<1x32xf32>
    %217 = arith.negf %216 : vector<1x32xf32>
    %218 = math.exp %217 : vector<1x32xf32>
    %cst_63 = arith.constant 1.000000e+00 : f32
    %219 = vector.broadcast %cst_63 : f32 to vector<1x32xf32>
    %220 = arith.addf %219, %218 : vector<1x32xf32>
    %221 = arith.divf %219, %220 : vector<1x32xf32>
    %222 = vector.extract_strided_slice %215 {offsets = [0, 32], sizes = [1, 32], strides = [1, 1]} : vector<1x128xf32> to vector<1x32xf32>
    %223 = arith.negf %222 : vector<1x32xf32>
    %224 = math.exp %223 : vector<1x32xf32>
    %cst_64 = arith.constant 1.000000e+00 : f32
    %225 = vector.broadcast %cst_64 : f32 to vector<1x32xf32>
    %226 = arith.addf %225, %224 : vector<1x32xf32>
    %227 = arith.divf %225, %226 : vector<1x32xf32>
    %228 = vector.extract_strided_slice %215 {offsets = [0, 64], sizes = [1, 32], strides = [1, 1]} : vector<1x128xf32> to vector<1x32xf32>
    %229 = math.tanh %228 : vector<1x32xf32>
    %230 = vector.extract_strided_slice %215 {offsets = [0, 96], sizes = [1, 32], strides = [1, 1]} : vector<1x128xf32> to vector<1x32xf32>
    %231 = arith.negf %230 : vector<1x32xf32>
    %232 = math.exp %231 : vector<1x32xf32>
    %cst_65 = arith.constant 1.000000e+00 : f32
    %233 = vector.broadcast %cst_65 : f32 to vector<1x32xf32>
    %234 = arith.addf %233, %232 : vector<1x32xf32>
    %235 = arith.divf %233, %234 : vector<1x32xf32>
    %236 = arith.mulf %227, %209 : vector<1x32xf32>
    %237 = arith.mulf %221, %229 : vector<1x32xf32>
    %238 = arith.addf %236, %237 : vector<1x32xf32>
    %239 = math.tanh %238 : vector<1x32xf32>
    %240 = arith.mulf %235, %239 : vector<1x32xf32>
    %c7_66 = arith.constant 7 : index
    %c0_67 = arith.constant 0 : index
    %241 = vector.load %arg9[%c7_66, %c0_67] : memref<8x32xf32, #tpu.memory_space<vmem>>, vector<1x32xf32>
    tpu.vector_store %arg9[%c7_66, %c0_67], %240 {strides = array<i32>} : memref<8x32xf32, #tpu.memory_space<vmem>>, vector<1x32xf32>,
    %c0_68 = arith.constant 0 : index
    %c0_69 = arith.constant 0 : index
    %242 = vector.load %arg9[%c0_68, %c0_69] : memref<8x32xf32, #tpu.memory_space<vmem>>, vector<8x32xf32>
    %c0_70 = arith.constant 0 : index
    %c0_71 = arith.constant 0 : index
    %243 = vector.load %arg4[%c0_70, %c0_71] : memref<32x20xf32, #tpu.memory_space<vmem>>, vector<32x20xf32>
    %cst_72 = arith.constant dense<0.000000e+00> : vector<8x20xf32>
    %244 = tpu.matmul %242, %243, %cst_72 {dimension_numbers = #tpu.dot_dimension_numbers<[1], [0], [0], [1], [0, 0, 1, 1], [], []>} : vector<8x32xf32>, vector<32x20xf32>, vector<8x20xf32> -> vector<8x20xf32>
    %c0_73 = arith.constant 0 : index
    %c0_74 = arith.constant 0 : index
    %245 = vector.load %arg5[%c0_73, %c0_74] : memref<1x20xf32, #tpu.memory_space<vmem>>, vector<1x20xf32>
    %246 = vector.broadcast %245 : vector<1x20xf32> to vector<8x20xf32>
    %247 = arith.addf %244, %246 : vector<8x20xf32>
    %cst_75 = arith.constant dense<0xFF800000> : vector<8xf32>
    %248 = vector.multi_reduction <maximumf>, %247, %cst_75 [1] : vector<8x20xf32> to vector<8xf32>
    %249 = vector.shape_cast %248 : vector<8xf32> to vector<8x1xf32>
    %250 = vector.broadcast %249 : vector<8x1xf32> to vector<8x20xf32>
    %251 = arith.subf %247, %250 : vector<8x20xf32>
    %252 = math.exp %251 : vector<8x20xf32>
    %c0_76 = arith.constant 0 : index
    %c0_77 = arith.constant 0 : index
    %253 = vector.load %arg6[%c0_76, %c0_77] : memref<20x20xf32, #tpu.memory_space<vmem>>, vector<20x20xf32>
    %cst_78 = arith.constant dense<0.000000e+00> : vector<8x20xf32>
    %254 = tpu.matmul %252, %253, %cst_78 {dimension_numbers = #tpu.dot_dimension_numbers<[1], [0], [0], [1], [0, 0, 1, 1], [], []>} : vector<8x20xf32>, vector<20x20xf32>, vector<8x20xf32> -> vector<8x20xf32>
    %255 = arith.divf %252, %254 : vector<8x20xf32>
    %c0_79 = arith.constant 0 : index
    %c0_80 = arith.constant 0 : index
    %256 = vector.load %arg7[%c0_79, %c0_80] : memref<8x20xf32, #tpu.memory_space<vmem>>, vector<8x20xf32>
    tpu.vector_store %arg7[%c0_79, %c0_80], %255 {strides = array<i32>} : memref<8x20xf32, #tpu.memory_space<vmem>>, vector<8x20xf32>,
    return
  }
}

</mosaic_0001>

<bundles_post_ra>
// kernel: model_lstm_forward.1
= control target key start
LH: loop header
LB: loop body
LE: loop exit
PB: predicated region body
PF: predicated region fallthrough
CT: control target
= control target key end

     0   :  { %12 = vsyncpa [#allocation5], 0  ;;  %s1051_s0 = inlined_call_operand.hbm [shape: f32[8,32], index: 0, kind: input, shape index: {}]   ;;  %s1052_s1 = inlined_call_operand.vmem [shape: f32[32,128], index: 1, kind: input, shape index: {}]   ;;  %s1053_s2 = inlined_call_operand.hbm [shape: f32[32,128], index: 2, kind: input, shape index: {}]   ;;  %s1054_s3 = inlined_call_operand.vmem [shape: f32[1,128], index: 3, kind: input, shape index: {}]   ;;  %s1055_s4 = inlined_call_operand.vmem [shape: f32[32,20], index: 4, kind: input, shape index: {}]   ;;  %s1056_s5 = inlined_call_operand.vmem [shape: f32[1,20], index: 5, kind: input, shape index: {}]   ;;  %s1057_s6 = inlined_call_operand.vmem [shape: f32[20,20], index: 6, kind: input, shape index: {}]   ;;  %s1058_s7 = inlined_call_operand.hbm [shape: f32[8,20], index: 7, kind: output, shape index: {}]  }
   0x1   :  { %13 = vsyncpa [#allocation8], 0 }
   0x2   :  { %14 = vsyncpa [#allocation6], 0  ;;  %s20_s26 = sshll.u32 %s1051_s0, 4  ;;  %s903_s27 = smov [#allocation4]   ;;  %s21_s26 = int_to_ptr.hbm [resolvable:$true] %s20_s26 }
   0x3   :  { %s22_s28 = sshll.u32 %s903_s27, 4  ;;  %s32_s8 = sshll.u32 %s1053_s2, 4  ;;  %s23_s28 = int_to_ptr.vmem [resolvable:$true] %s22_s28  ;;  %s33_s8 = int_to_ptr.hbm [resolvable:$true] %s32_s8 }
   0x4   :  { %25 = dma.hbm_to_vmem [thread:$0]  %s21_s26, 128, %s23_s28, [#allocation5]  }
   0x5   :  { %s904_s9 = smov [#allocation7]   ;;  %s905_s11 = smov 128  }
   0x6   :  { %s34_s10 = sshll.u32 %s904_s9, 4  ;;  %s906_s12 = smov 8   ;;  %s35_s10 = int_to_ptr.vmem [resolvable:$true] %s34_s10 }
   0x7   :  { %40 = dma.hbm_to_vmem [thread:$0]  %s33_s8, 512, %s35_s10, [#allocation8], %s905_s11, %s905_s11, %s906_s12  }
   0x8   :  { %897 = dma.done.wait [#allocation5], 128  }
   0x9   :  { %898 = vsyncadd [#allocation5], 4294967168 }
   0xa   :  { %899 = dma.done.wait [#allocation8], 512  }
   0xb   :  { %900 = vsyncadd [#allocation8], 4294966784  ;;  %v61_v0 = vld [vmem:[%s1052_s1 + $0x18] sm:$0xff]  ;;  %v60_v1 = vld [vmem:[%s1052_s1 + $0x10] sm:$0xff]  ;;  %vm66_vm0 = vcmask 261120   ;;  %v907_v9 = vmov 0.0  }
   0xc   :  { %82 = vmatpush.msra.mxu0 %v61_v0  ;;  %v94_v2 = vld [vmem:[#allocation7 + $0x18] sm:$0xff]  ;;  %v59_v3 = vld [vmem:[%s1052_s1 + $0x8] sm:$0xff]  ;;  %v92_v5 = vld [vmem:[#allocation7 + $0x8] sm:$0xff]  ;;  %s908_s20 = smov 64   ;;  %vm161_vm5 = vcmask 253952   ;;  %s717_s14 = sshll.u32 %s1058_s7, 4  ;;  %s718_s14 = int_to_ptr.hbm [resolvable:$true] %s717_s14 }
   0xd   :  { %111 = vmatpush.msra.mxu1 %v94_v2  ;;  %v93_v4 = vld [vmem:[#allocation7 + $0x10] sm:$0xff]  ;;  %178 = vmatpush.msra.mxu2 %v94_v2  ;;  %v58_v6 = vld [vmem:[%s1052_s1] sm:$0xff]  ;;  %v57_v7 = vld [vmem:[#allocation4] sm:$0xff] }
   0xe   :  { %83 = vmatpush.msra.mxu0 %v60_v1  ;;  %244 = vmatpush.msra.mxu3 %v94_v2  ;;  %v91_v8 = vld [vmem:[#allocation7] sm:$0xff]  ;;  %v755_v10 = vld [vmem:[%s1054_s3] ss:$0 sm:$0xff]  ;;  %s909_s3 = smov 32  }
   0xf   :  { %112 = vmatpush.msra.mxu1 %v93_v4  ;;  %179 = vmatpush.msra.mxu2 %v93_v4 }
  0x10   :  { %84 = vmatpush.msra.mxu0 %v59_v3  ;;  %245 = vmatpush.msra.mxu3 %v93_v4 }
  0x11   :  { %113 = vmatpush.msra.mxu1 %v92_v5  ;;  %180 = vmatpush.msra.mxu2 %v92_v5 }
  0x12   :  { %85 = vmatpush.msra.mxu0 %v58_v6  ;;  %246 = vmatpush.msra.mxu3 %v92_v5 }
  0x13   :  { %728 = vmatmul.msk.f32.vlgmr.msra.gmra.mxu0 %vm66_vm0, %v57_v7  ;;  %114 = vmatpush.msra.mxu1 %v91_v8 }
  0x14   :  { %115 = vmatmul.f32.vlgmr.msra.gmra.mxu1 %v907_v9  ;;  %181 = vmatpush.msra.mxu2 %v91_v8 }
  0x15   :  { %247 = vmatpush.msra.mxu3 %v91_v8  ;;  %310 = vmatpush.msrb.mxu0 %v94_v2 }
  0x16   :  { %376 = vmatpush.msrb.mxu1 %v94_v2  ;;  %442 = vmatpush.msrb.mxu2 %v94_v2 }
  0x17   :  { %311 = vmatpush.msrb.mxu0 %v93_v4  ;;  %508 = vmatpush.msrb.mxu3 %v94_v2 }
  0x18   :  { %377 = vmatpush.msrb.mxu1 %v93_v4  ;;  %443 = vmatpush.msrb.mxu2 %v93_v4 }
  0x19   :  { %312 = vmatpush.msrb.mxu0 %v92_v5  ;;  %509 = vmatpush.msrb.mxu3 %v93_v4 }
  0x1a   :  { %378 = vmatpush.msrb.mxu1 %v92_v5  ;;  %444 = vmatpush.msrb.mxu2 %v92_v5 }
  0x1b   :  { %313 = vmatpush.msrb.mxu0 %v91_v8  ;;  %510 = vmatpush.msrb.mxu3 %v92_v5 }
  0x1c   :  { %379 = vmatpush.msrb.mxu1 %v91_v8  ;;  %445 = vmatpush.msrb.mxu2 %v91_v8 }
  0x1d   :  { %511 = vmatpush.msrb.mxu3 %v91_v8  ;;  %574 = vmatpush.msra.mxu0 %v94_v2 }
  0x1f   :  { %575 = vmatpush.msra.mxu0 %v93_v4 }
  0x21   :  { %576 = vmatpush.msra.mxu0 %v92_v5 }
  0x23   :  { %577 = vmatpush.msra.mxu0 %v91_v8 }
  0x90   :  { %v87_v11 = vpop.f32.mrf.mxu0 }
  0x91   :  { %v88_v12 = vadd.f32 %v755_v10, %v87_v11  ;;  %v116_v13 = vpop.f32.mrf.mxu1 }
  0x93   :  { %90 = vst [vmem:[#allocation2] sm:$0xff] %v88_v12 }
  0x9a   :  { %v95_v14 = vld [vmem:[#allocation2] sm:$0x1]  ;;  %v163_v39 = vld [vmem:[#allocation2 + $0x1] sm:$0x1]  ;;  %v229_v1 = vld [vmem:[#allocation2 + $0x2] sm:$0x1] }
  0x9b   :  { %v119_v15 = vadd.f32 %v116_v13, %v95_v14 }
  0x9d   :  { %757 = vtanh.f32 %v119_v15  ;;  %v729_v17 = vmul.f32 -1.442695, %v119_v15 }
  0x9f   :  { %759 = vpow2.f32 %v729_v17 }
  0xa3   :  { %v758_v16 = vpop.eup %757 }
  0xa4   :  { %142 = vrot.lane.b32.xlu0 %v758_v16, %s908_s20 }
  0xa5   :  { %v760_v18 = vpop.eup %759 }
  0xa6   :  { %v123_v19 = vadd.f32 1.0, %v760_v18 }
  0xa8   :  { %761 = vrcp.f32 %v123_v19  ;;  %v135_v25 = vand.u32 2147483648, %v123_v19  ;;  %vm129_vm2 = vweird.f32 %v123_v19  ;;  %v133_v26 = vand.u32 2147483647, %v123_v19 }
  0xaa   :  { %v136_v28 = vor.u32 1.1754944e-38, %v135_v25  ;;  %vm134_vm4 = vcmp.eq.f32.partialorder %v133_v26, 8.507059e+37 }
  0xae   :  { %v762_v20 = vpop.eup %761 }
  0xaf   :  { %v125_v21 = vmul.f32 %v762_v20, %v123_v19  ;;  %vm130_vm1 = vweird.f32 %v762_v20 }
  0xb0   :  { %vm131_vm3 = vmor %vm129_vm2, %vm130_vm1 }
  0xb1   :  { %v126_v22 = vsub.f32 1.0, %v125_v21 }
  0xb3   :  { %v127_v23 = vmul.f32 %v762_v20, %v126_v22 }
  0xb5   :  { %v128_v24 = vadd.f32 %v762_v20, %v127_v23 }
  0xb7   :  { %v132_v27 = vsel %vm131_vm3, %v762_v20, %v128_v24 }
  0xb8   :  { %v137_v30 = vsel %vm134_vm4, %v136_v28, %v132_v27  ;;  %v295_v27 = vld [vmem:[#allocation2 + $0x3] sm:$0x1] }
  0xb9   :  { %v140_v32 = vmul.f32 0.0, %v137_v30 }
 0x116   :  { %v143_v29 = vpop.permute.xlu0 %142 }
 0x117   :  { %v145_v31 = vmul.f32 %v143_v29, %v137_v30 }
 0x119   :  { %147 = vrot.lane.b32.xlu0 %v145_v31, %s909_s3 }
 0x18b   :  { %v148_v33 = vpop.permute.xlu0 %147 }
 0x18c   :  { %v150_v34 = vadd.f32 %v148_v33, %v140_v32 }
 0x18e   :  { %763 = vtanh.f32 %v150_v34 }
 0x194   :  { %v764_v35 = vpop.eup %763 }
 0x195   :  { %153 = vrot.lane.b32.xlu1 %v764_v35, %s908_s20 }
 0x207   :  { %v154_v36 = vpop.permute.xlu1 %153 }
 0x208   :  { %v156_v37 = vmul.f32 %v154_v36, %v137_v30 }
 0x20a   :  { %158 = vrot.lane.b32.xlu1 %v156_v37, %s909_s3 }
 0x27c   :  { %v159_v38 = vpop.permute.xlu1 %158 }
 0x27d   :  { %162 = vst.msk [vmem:[#allocation3] sm:$0x1] %vm161_vm5, %v159_v38  ;;  %730 = vmatmul.msk.f32.vlgmr.msra.gmra.mxu2 %vm66_vm0, %v159_v38 }
 0x300   :  { %v183_v40 = vpop.f32.mrf.mxu2 }
 0x301   :  { %v186_v41 = vadd.f32 %v183_v40, %v163_v39 }
 0x303   :  { %765 = vtanh.f32 %v186_v41  ;;  %v731_v43 = vmul.f32 -1.442695, %v186_v41 }
 0x305   :  { %767 = vpow2.f32 %v731_v43 }
 0x309   :  { %v766_v42 = vpop.eup %765 }
 0x30a   :  { %209 = vrot.lane.b32.xlu2 %v766_v42, %s908_s20 }
 0x30b   :  { %v768_v44 = vpop.eup %767 }
 0x30c   :  { %v190_v45 = vadd.f32 1.0, %v768_v44 }
 0x30e   :  { %769 = vrcp.f32 %v190_v45  ;;  %v202_v51 = vand.u32 2147483648, %v190_v45  ;;  %vm196_vm7 = vweird.f32 %v190_v45  ;;  %v200_v52 = vand.u32 2147483647, %v190_v45 }
 0x310   :  { %v203_v54 = vor.u32 1.1754944e-38, %v202_v51  ;;  %vm201_vm9 = vcmp.eq.f32.partialorder %v200_v52, 8.507059e+37 }
 0x314   :  { %v770_v46 = vpop.eup %769 }
 0x315   :  { %v192_v47 = vmul.f32 %v770_v46, %v190_v45  ;;  %vm197_vm6 = vweird.f32 %v770_v46 }
 0x316   :  { %vm198_vm8 = vmor %vm196_vm7, %vm197_vm6 }
 0x317   :  { %v193_v48 = vsub.f32 1.0, %v192_v47 }
 0x319   :  { %v194_v49 = vmul.f32 %v770_v46, %v193_v48 }
 0x31b   :  { %v195_v50 = vadd.f32 %v770_v46, %v194_v49 }
 0x31d   :  { %v199_v53 = vsel %vm198_vm8, %v770_v46, %v195_v50 }
 0x31e   :  { %v204_v56 = vsel %vm201_vm9, %v203_v54, %v199_v53  ;;  %v361_v53 = vld [vmem:[#allocation2 + $0x4] sm:$0x1] }
 0x31f   :  { %v207_v58 = vmul.f32 %v204_v56, %v150_v34 }
 0x364   :  { %v210_v55 = vpop.permute.xlu2 %209 }
 0x365   :  { %v212_v57 = vmul.f32 %v210_v55, %v204_v56 }
 0x367   :  { %214 = vrot.lane.b32.xlu2 %v212_v57, %s909_s3 }
 0x3c1   :  { %v215_v59 = vpop.permute.xlu2 %214 }
 0x3c2   :  { %v217_v60 = vadd.f32 %v215_v59, %v207_v58 }
 0x3c4   :  { %771 = vtanh.f32 %v217_v60 }
 0x3ca   :  { %v772_v61 = vpop.eup %771 }
 0x3cb   :  { %220 = vrot.lane.b32.xlu0 %v772_v61, %s908_s20 }
 0x43d   :  { %v221_v62 = vpop.permute.xlu0 %220 }
 0x43e   :  { %v223_v63 = vmul.f32 %v221_v62, %v204_v56 }
 0x440   :  { %225 = vrot.lane.b32.xlu1 %v223_v63, %s909_s3 }
 0x4b2   :  { %v226_v0 = vpop.permute.xlu1 %225 }
 0x4b3   :  { %228 = vst.msk [vmem:[#allocation3 + $0x1] sm:$0x1] %vm161_vm5, %v226_v0  ;;  %732 = vmatmul.msk.f32.vlgmr.msra.gmra.mxu3 %vm66_vm0, %v226_v0 }
 0x536   :  { %v249_v2 = vpop.f32.mrf.mxu3 }
 0x537   :  { %v252_v3 = vadd.f32 %v249_v2, %v229_v1 }
 0x539   :  { %773 = vtanh.f32 %v252_v3  ;;  %v733_v5 = vmul.f32 -1.442695, %v252_v3 }
 0x53b   :  { %775 = vpow2.f32 %v733_v5 }
 0x53f   :  { %v774_v4 = vpop.eup %773 }
 0x540   :  { %275 = vrot.lane.b32.xlu2 %v774_v4, %s908_s20 }
 0x541   :  { %v776_v6 = vpop.eup %775 }
 0x542   :  { %v256_v7 = vadd.f32 1.0, %v776_v6 }
 0x544   :  { %777 = vrcp.f32 %v256_v7  ;;  %v268_v13 = vand.u32 2147483648, %v256_v7  ;;  %vm262_vm11 = vweird.f32 %v256_v7  ;;  %v266_v14 = vand.u32 2147483647, %v256_v7 }
 0x546   :  { %v269_v16 = vor.u32 1.1754944e-38, %v268_v13  ;;  %vm267_vm13 = vcmp.eq.f32.partialorder %v266_v14, 8.507059e+37 }
 0x54a   :  { %v778_v8 = vpop.eup %777 }
 0x54b   :  { %v258_v9 = vmul.f32 %v778_v8, %v256_v7  ;;  %vm263_vm10 = vweird.f32 %v778_v8 }
 0x54c   :  { %vm264_vm12 = vmor %vm262_vm11, %vm263_vm10 }
 0x54d   :  { %v259_v10 = vsub.f32 1.0, %v258_v9 }
 0x54f   :  { %v260_v11 = vmul.f32 %v778_v8, %v259_v10 }
 0x551   :  { %v261_v12 = vadd.f32 %v778_v8, %v260_v11 }
 0x553   :  { %v265_v15 = vsel %vm264_vm12, %v778_v8, %v261_v12 }
 0x554   :  { %v270_v18 = vsel %vm267_vm13, %v269_v16, %v265_v15  ;;  %v427_v15 = vld [vmem:[#allocation2 + $0x5] sm:$0x1] }
 0x555   :  { %v273_v20 = vmul.f32 %v270_v18, %v217_v60 }
 0x59a   :  { %v276_v17 = vpop.permute.xlu2 %275 }
 0x59b   :  { %v278_v19 = vmul.f32 %v276_v17, %v270_v18 }
 0x59d   :  { %280 = vrot.lane.b32.xlu0 %v278_v19, %s909_s3 }
 0x60f   :  { %v281_v21 = vpop.permute.xlu0 %280 }
 0x610   :  { %v283_v22 = vadd.f32 %v281_v21, %v273_v20 }
 0x612   :  { %779 = vtanh.f32 %v283_v22 }
 0x618   :  { %v780_v23 = vpop.eup %779 }
 0x619   :  { %286 = vrot.lane.b32.xlu1 %v780_v23, %s908_s20 }
 0x68b   :  { %v287_v24 = vpop.permute.xlu1 %286 }
 0x68c   :  { %v289_v25 = vmul.f32 %v287_v24, %v270_v18 }
 0x68e   :  { %291 = vrot.lane.b32.xlu2 %v289_v25, %s909_s3 }
 0x6e8   :  { %v292_v26 = vpop.permute.xlu2 %291 }
 0x6e9   :  { %294 = vst.msk [vmem:[#allocation3 + $0x2] sm:$0x1] %vm161_vm5, %v292_v26  ;;  %734 = vmatmul.msk.f32.vlgmr.msrb.gmra.mxu0 %vm66_vm0, %v292_v26 }
 0x766   :  { %v315_v28 = vpop.f32.mrf.mxu0 }
 0x767   :  { %v318_v29 = vadd.f32 %v315_v28, %v295_v27 }
 0x769   :  { %781 = vtanh.f32 %v318_v29  ;;  %v735_v31 = vmul.f32 -1.442695, %v318_v29 }
 0x76b   :  { %783 = vpow2.f32 %v735_v31 }
 0x76f   :  { %v782_v30 = vpop.eup %781 }
 0x770   :  { %341 = vrot.lane.b32.xlu0 %v782_v30, %s908_s20 }
 0x771   :  { %v784_v32 = vpop.eup %783 }
 0x772   :  { %v322_v33 = vadd.f32 1.0, %v784_v32 }
 0x774   :  { %785 = vrcp.f32 %v322_v33  ;;  %v334_v39 = vand.u32 2147483648, %v322_v33  ;;  %vm328_vm15 = vweird.f32 %v322_v33  ;;  %v332_v40 = vand.u32 2147483647, %v322_v33 }
 0x776   :  { %v335_v42 = vor.u32 1.1754944e-38, %v334_v39  ;;  %vm333_vm2 = vcmp.eq.f32.partialorder %v332_v40, 8.507059e+37 }
 0x77a   :  { %v786_v34 = vpop.eup %785 }
 0x77b   :  { %v324_v35 = vmul.f32 %v786_v34, %v322_v33  ;;  %vm329_vm14 = vweird.f32 %v786_v34 }
 0x77c   :  { %vm330_vm1 = vmor %vm328_vm15, %vm329_vm14 }
 0x77d   :  { %v325_v36 = vsub.f32 1.0, %v324_v35 }
 0x77f   :  { %v326_v37 = vmul.f32 %v786_v34, %v325_v36 }
 0x781   :  { %v327_v38 = vadd.f32 %v786_v34, %v326_v37 }
 0x783   :  { %v331_v41 = vsel %vm330_vm1, %v786_v34, %v327_v38 }
 0x784   :  { %v336_v44 = vsel %vm333_vm2, %v335_v42, %v331_v41  ;;  %v493_v41 = vld [vmem:[#allocation2 + $0x6] sm:$0x1] }
 0x785   :  { %v339_v46 = vmul.f32 %v336_v44, %v283_v22 }
 0x7e2   :  { %v342_v43 = vpop.permute.xlu0 %341 }
 0x7e3   :  { %v344_v45 = vmul.f32 %v342_v43, %v336_v44 }
 0x7e5   :  { %346 = vrot.lane.b32.xlu1 %v344_v45, %s909_s3 }
 0x857   :  { %v347_v47 = vpop.permute.xlu1 %346 }
 0x858   :  { %v349_v48 = vadd.f32 %v347_v47, %v339_v46 }
 0x85a   :  { %787 = vtanh.f32 %v349_v48 }
 0x860   :  { %v788_v49 = vpop.eup %787 }
 0x861   :  { %352 = vrot.lane.b32.xlu2 %v788_v49, %s908_s20 }
 0x8bb   :  { %v353_v50 = vpop.permute.xlu2 %352 }
 0x8bc   :  { %v355_v51 = vmul.f32 %v353_v50, %v336_v44 }
 0x8be   :  { %357 = vrot.lane.b32.xlu0 %v355_v51, %s909_s3 }
 0x930   :  { %v358_v52 = vpop.permute.xlu0 %357 }
 0x931   :  { %360 = vst.msk [vmem:[#allocation3 + $0x3] sm:$0x1] %vm161_vm5, %v358_v52  ;;  %736 = vmatmul.msk.f32.vlgmr.msrb.gmra.mxu1 %vm66_vm0, %v358_v52 }
 0x9ae   :  { %v381_v54 = vpop.f32.mrf.mxu1 }
 0x9af   :  { %v384_v55 = vadd.f32 %v381_v54, %v361_v53 }
 0x9b1   :  { %789 = vtanh.f32 %v384_v55  ;;  %v737_v57 = vmul.f32 -1.442695, %v384_v55 }
 0x9b3   :  { %791 = vpow2.f32 %v737_v57 }
 0x9b7   :  { %v790_v56 = vpop.eup %789 }
 0x9b8   :  { %407 = vrot.lane.b32.xlu1 %v790_v56, %s908_s20 }
 0x9b9   :  { %v792_v58 = vpop.eup %791 }
 0x9ba   :  { %v388_v59 = vadd.f32 1.0, %v792_v58 }
 0x9bc   :  { %793 = vrcp.f32 %v388_v59  ;;  %v400_v1 = vand.u32 2147483648, %v388_v59  ;;  %vm394_vm4 = vweird.f32 %v388_v59  ;;  %v398_v2 = vand.u32 2147483647, %v388_v59 }
 0x9be   :  { %v401_v4 = vor.u32 1.1754944e-38, %v400_v1  ;;  %vm399_vm7 = vcmp.eq.f32.partialorder %v398_v2, 8.507059e+37 }
 0x9c2   :  { %v794_v60 = vpop.eup %793 }
 0x9c3   :  { %v390_v61 = vmul.f32 %v794_v60, %v388_v59  ;;  %vm395_vm3 = vweird.f32 %v794_v60 }
 0x9c4   :  { %vm396_vm6 = vmor %vm394_vm4, %vm395_vm3 }
 0x9c5   :  { %v391_v62 = vsub.f32 1.0, %v390_v61 }
 0x9c7   :  { %v392_v63 = vmul.f32 %v794_v60, %v391_v62 }
 0x9c9   :  { %v393_v0 = vadd.f32 %v794_v60, %v392_v63 }
 0x9cb   :  { %v397_v3 = vsel %vm396_vm6, %v794_v60, %v393_v0  ;;  %vm657_vm6 = vcmask 162816  }
 0x9cc   :  { %v402_v6 = vsel %vm399_vm7, %v401_v4, %v397_v3  ;;  %v559_v3 = vld [vmem:[#allocation2 + $0x7] sm:$0x1]  ;;  %vm670_vm7 = vcmask 1043456  }
 0x9cd   :  { %v405_v8 = vmul.f32 %v402_v6, %v349_v48 }
 0xa2a   :  { %v408_v5 = vpop.permute.xlu1 %407 }
 0xa2b   :  { %v410_v7 = vmul.f32 %v408_v5, %v402_v6 }
 0xa2d   :  { %412 = vrot.lane.b32.xlu2 %v410_v7, %s909_s3 }
 0xa87   :  { %v413_v9 = vpop.permute.xlu2 %412 }
 0xa88   :  { %v415_v10 = vadd.f32 %v413_v9, %v405_v8 }
 0xa8a   :  { %795 = vtanh.f32 %v415_v10 }
 0xa90   :  { %v796_v11 = vpop.eup %795 }
 0xa91   :  { %418 = vrot.lane.b32.xlu0 %v796_v11, %s908_s20 }
 0xb03   :  { %v419_v12 = vpop.permute.xlu0 %418 }
 0xb04   :  { %v421_v13 = vmul.f32 %v419_v12, %v402_v6 }
 0xb06   :  { %423 = vrot.lane.b32.xlu1 %v421_v13, %s909_s3 }
 0xb78   :  { %v424_v14 = vpop.permute.xlu1 %423 }
 0xb79   :  { %426 = vst.msk [vmem:[#allocation3 + $0x4] sm:$0x1] %vm161_vm5, %v424_v14  ;;  %738 = vmatmul.msk.f32.vlgmr.msrb.gmra.mxu2 %vm66_vm0, %v424_v14 }
 0xbfc   :  { %v447_v16 = vpop.f32.mrf.mxu2 }
 0xbfd   :  { %v450_v17 = vadd.f32 %v447_v16, %v427_v15 }
 0xbff   :  { %797 = vtanh.f32 %v450_v17  ;;  %v739_v19 = vmul.f32 -1.442695, %v450_v17 }
 0xc01   :  { %799 = vpow2.f32 %v739_v19 }
 0xc05   :  { %v798_v18 = vpop.eup %797 }
 0xc06   :  { %473 = vrot.lane.b32.xlu2 %v798_v18, %s908_s20 }
 0xc07   :  { %v800_v20 = vpop.eup %799 }
 0xc08   :  { %v454_v21 = vadd.f32 1.0, %v800_v20 }
 0xc0a   :  { %801 = vrcp.f32 %v454_v21  ;;  %v466_v27 = vand.u32 2147483648, %v454_v21  ;;  %vm460_vm9 = vweird.f32 %v454_v21  ;;  %v464_v28 = vand.u32 2147483647, %v454_v21 }
 0xc0c   :  { %v467_v30 = vor.u32 1.1754944e-38, %v466_v27  ;;  %vm465_vm11 = vcmp.eq.f32.partialorder %v464_v28, 8.507059e+37  ;;  %v629_v28 = vld [vmem:[%s1055_s4 + $0x18] sm:$0xff] }
 0xc0d   :  { %649 = vmatpush.msra.mxu1 %v629_v28 }
 0xc10   :  { %v802_v22 = vpop.eup %801 }
 0xc11   :  { %v456_v23 = vmul.f32 %v802_v22, %v454_v21  ;;  %vm461_vm8 = vweird.f32 %v802_v22 }
 0xc12   :  { %vm462_vm10 = vmor %vm460_vm9, %vm461_vm8 }
 0xc13   :  { %v457_v24 = vsub.f32 1.0, %v456_v23 }
 0xc15   :  { %v458_v25 = vmul.f32 %v802_v22, %v457_v24 }
 0xc17   :  { %v459_v26 = vadd.f32 %v802_v22, %v458_v25 }
 0xc19   :  { %v463_v29 = vsel %vm462_vm10, %v802_v22, %v459_v26 }
 0xc1a   :  { %v468_v32 = vsel %vm465_vm11, %v467_v30, %v463_v29  ;;  %v628_v29 = vld [vmem:[%s1055_s4 + $0x10] sm:$0xff]  ;;  %v627_v30 = vld [vmem:[%s1055_s4 + $0x8] sm:$0xff] }
 0xc1b   :  { %v471_v34 = vmul.f32 %v468_v32, %v415_v10  ;;  %650 = vmatpush.msra.mxu1 %v628_v29 }
 0xc1d   :  { %651 = vmatpush.msra.mxu1 %v627_v30 }
 0xc60   :  { %v474_v31 = vpop.permute.xlu2 %473 }
 0xc61   :  { %v476_v33 = vmul.f32 %v474_v31, %v468_v32  ;;  %v626_v31 = vld [vmem:[%s1055_s4] sm:$0xff] }
 0xc62   :  { %652 = vmatpush.msra.mxu1 %v626_v31 }
 0xc63   :  { %478 = vrot.lane.b32.xlu0 %v476_v33, %s909_s3 }
 0xcd5   :  { %v479_v35 = vpop.permute.xlu0 %478 }
 0xcd6   :  { %v481_v36 = vadd.f32 %v479_v35, %v471_v34  ;;  %v756_v34 = vld [vmem:[%s1056_s5] ss:$0 sm:$0xff]  ;;  %s910_s5 = smov [#allocation9]  }
 0xcd8   :  { %803 = vtanh.f32 %v481_v36 }
 0xcde   :  { %v804_v37 = vpop.eup %803 }
 0xcdf   :  { %484 = vrot.lane.b32.xlu1 %v804_v37, %s908_s20 }
 0xd51   :  { %v485_v38 = vpop.permute.xlu1 %484 }
 0xd52   :  { %v487_v39 = vmul.f32 %v485_v38, %v468_v32  ;;  %v666_v38 = vld [vmem:[%s1057_s6 + $0x10] sm:$0xf] }
 0xd53   :  { %745 = vmatpush.msk.msra.mxu2 %vm670_vm7, %v666_v38 }
 0xd54   :  { %489 = vrot.lane.b32.xlu2 %v487_v39, %s909_s3  ;;  %v665_v39 = vld [vmem:[%s1057_s6 + $0x8] sm:$0xff] }
 0xd55   :  { %688 = vmatpush.msra.mxu2 %v665_v39 }
 0xdae   :  { %v490_v40 = vpop.permute.xlu2 %489 }
 0xdaf   :  { %492 = vst.msk [vmem:[#allocation3 + $0x5] sm:$0x1] %vm161_vm5, %v490_v40  ;;  %740 = vmatmul.msk.f32.vlgmr.msrb.gmra.mxu3 %vm66_vm0, %v490_v40  ;;  %v664_v40 = vld [vmem:[%s1057_s6] sm:$0xff]  ;;  %s715_s6 = sshll.u32 %s910_s5, 4  ;;  %s716_s6 = int_to_ptr.vmem [resolvable:$true] %s715_s6 }
 0xdb0   :  { %689 = vmatpush.msra.mxu2 %v664_v40 }
 0xe32   :  { %v513_v42 = vpop.f32.mrf.mxu3 }
 0xe33   :  { %v516_v43 = vadd.f32 %v513_v42, %v493_v41 }
 0xe35   :  { %805 = vtanh.f32 %v516_v43  ;;  %v741_v45 = vmul.f32 -1.442695, %v516_v43 }
 0xe37   :  { %807 = vpow2.f32 %v741_v45 }
 0xe3b   :  { %v806_v44 = vpop.eup %805 }
 0xe3c   :  { %539 = vrot.lane.b32.xlu0 %v806_v44, %s908_s20 }
 0xe3d   :  { %v808_v46 = vpop.eup %807 }
 0xe3e   :  { %v520_v47 = vadd.f32 1.0, %v808_v46 }
 0xe40   :  { %809 = vrcp.f32 %v520_v47  ;;  %v532_v53 = vand.u32 2147483648, %v520_v47  ;;  %vm526_vm13 = vweird.f32 %v520_v47  ;;  %v530_v54 = vand.u32 2147483647, %v520_v47 }
 0xe42   :  { %v533_v56 = vor.u32 1.1754944e-38, %v532_v53  ;;  %vm531_vm15 = vcmp.eq.f32.partialorder %v530_v54, 8.507059e+37 }
 0xe46   :  { %v810_v48 = vpop.eup %809 }
 0xe47   :  { %v522_v49 = vmul.f32 %v810_v48, %v520_v47  ;;  %vm527_vm12 = vweird.f32 %v810_v48 }
 0xe48   :  { %vm528_vm14 = vmor %vm526_vm13, %vm527_vm12 }
 0xe49   :  { %v523_v50 = vsub.f32 1.0, %v522_v49 }
 0xe4b   :  { %v524_v51 = vmul.f32 %v810_v48, %v523_v50 }
 0xe4d   :  { %v525_v52 = vadd.f32 %v810_v48, %v524_v51 }
 0xe4f   :  { %v529_v55 = vsel %vm528_vm14, %v810_v48, %v525_v52 }
 0xe50   :  { %v534_v58 = vsel %vm531_vm15, %v533_v56, %v529_v55 }
 0xe51   :  { %v537_v60 = vmul.f32 %v534_v58, %v481_v36 }
 0xeae   :  { %v540_v57 = vpop.permute.xlu0 %539 }
 0xeaf   :  { %v542_v59 = vmul.f32 %v540_v57, %v534_v58 }
 0xeb1   :  { %544 = vrot.lane.b32.xlu1 %v542_v59, %s909_s3 }
 0xf23   :  { %v545_v61 = vpop.permute.xlu1 %544 }
 0xf24   :  { %v547_v62 = vadd.f32 %v545_v61, %v537_v60 }
 0xf26   :  { %811 = vtanh.f32 %v547_v62 }
 0xf2c   :  { %v812_v63 = vpop.eup %811 }
 0xf2d   :  { %550 = vrot.lane.b32.xlu2 %v812_v63, %s908_s20 }
 0xf87   :  { %v551_v0 = vpop.permute.xlu2 %550 }
 0xf88   :  { %v553_v1 = vmul.f32 %v551_v0, %v534_v58 }
 0xf8a   :  { %555 = vrot.lane.b32.xlu0 %v553_v1, %s909_s3 }
 0xffc   :  { %v556_v2 = vpop.permute.xlu0 %555 }
 0xffd   :  { %558 = vst.msk [vmem:[#allocation3 + $0x6] sm:$0x1] %vm161_vm5, %v556_v2  ;;  %742 = vmatmul.msk.f32.vlgmr.msra.gmra.mxu0 %vm66_vm0, %v556_v2 }
0x107a   :  { %v579_v4 = vpop.f32.mrf.mxu0 }
0x107b   :  { %v582_v5 = vadd.f32 %v579_v4, %v559_v3 }
0x107d   :  { %813 = vtanh.f32 %v582_v5  ;;  %v743_v7 = vmul.f32 -1.442695, %v582_v5 }
0x107f   :  { %815 = vpow2.f32 %v743_v7 }
0x1083   :  { %v814_v6 = vpop.eup %813 }
0x1084   :  { %605 = vrot.lane.b32.xlu1 %v814_v6, %s908_s20 }
0x1085   :  { %v816_v8 = vpop.eup %815 }
0x1086   :  { %v586_v9 = vadd.f32 1.0, %v816_v8 }
0x1088   :  { %817 = vrcp.f32 %v586_v9  ;;  %v598_v15 = vand.u32 2147483648, %v586_v9  ;;  %vm592_vm2 = vweird.f32 %v586_v9  ;;  %v596_v16 = vand.u32 2147483647, %v586_v9 }
0x108a   :  { %v599_v18 = vor.u32 1.1754944e-38, %v598_v15  ;;  %vm597_vm4 = vcmp.eq.f32.partialorder %v596_v16, 8.507059e+37 }
0x108e   :  { %v818_v10 = vpop.eup %817 }
0x108f   :  { %v588_v11 = vmul.f32 %v818_v10, %v586_v9  ;;  %vm593_vm1 = vweird.f32 %v818_v10 }
0x1090   :  { %vm594_vm3 = vmor %vm592_vm2, %vm593_vm1 }
0x1091   :  { %v589_v12 = vsub.f32 1.0, %v588_v11 }
0x1093   :  { %v590_v13 = vmul.f32 %v818_v10, %v589_v12 }
0x1095   :  { %v591_v14 = vadd.f32 %v818_v10, %v590_v13 }
0x1097   :  { %v595_v17 = vsel %vm594_vm3, %v818_v10, %v591_v14 }
0x1098   :  { %v600_v20 = vsel %vm597_vm4, %v599_v18, %v595_v17 }
0x1099   :  { %v603_v22 = vmul.f32 %v600_v20, %v547_v62 }
0x10f6   :  { %v606_v19 = vpop.permute.xlu1 %605 }
0x10f7   :  { %v608_v21 = vmul.f32 %v606_v19, %v600_v20 }
0x10f9   :  { %610 = vrot.lane.b32.xlu2 %v608_v21, %s909_s3 }
0x1153   :  { %v611_v23 = vpop.permute.xlu2 %610 }
0x1154   :  { %v613_v24 = vadd.f32 %v611_v23, %v603_v22 }
0x1156   :  { %819 = vtanh.f32 %v613_v24 }
0x115c   :  { %v820_v25 = vpop.eup %819 }
0x115d   :  { %616 = vrot.lane.b32.xlu0 %v820_v25, %s908_s20 }
0x11cf   :  { %v617_v26 = vpop.permute.xlu0 %616 }
0x11d0   :  { %v619_v27 = vmul.f32 %v617_v26, %v600_v20 }
0x11d2   :  { %621 = vrot.lane.b32.xlu1 %v619_v27, %s909_s3 }
0x1244   :  { %v622_v32 = vpop.permute.xlu1 %621 }
0x1245   :  { %624 = vst.msk [vmem:[#allocation3 + $0x7] sm:$0x1] %vm161_vm5, %v622_v32 }
0x124c   :  { %v625_v33 = vld [vmem:[#allocation3] sm:$0xff] }
0x124d   :  { %744 = vmatmul.msk.f32.vlgmr.msra.gmra.mxu1 %vm66_vm0, %v625_v33 }
0x12ca   :  { %v654_v35 = vpop.f32.mrf.mxu1 }
0x12cb   :  { %v655_v36 = vadd.f32 %v756_v34, %v654_v35 }
0x12cd   :  { %v658_v37 = vsel %vm657_vm6, %v655_v36, -inf }
0x12ce   :  { %659 = vmax.xlane.f32.xlu2 %v658_v37 }
0x1341   :  { %v660_v41 = vpop.xlane.xlu2 %659 }
0x1342   :  { %v661_v42 = vsub.f32 %v655_v36, %v660_v41 }
0x1344   :  { %v662_v43 = vmul.f32 1.442695, %v661_v42 }
0x1346   :  { %821 = vpow2.f32 %v662_v43 }
0x134c   :  { %v822_v44 = vpop.eup %821 }
0x134d   :  { %746 = vmatmul.msk.f32.vlgmr.msra.gmra.mxu2 %vm657_vm6, %v822_v44 }
0x13d0   :  { %v691_v45 = vpop.f32.mrf.mxu2 }
0x13d1   :  { %823 = vrcp.f32 %v691_v45  ;;  %v705_v49 = vand.u32 2147483648, %v691_v45  ;;  %v703_v51 = vand.u32 2147483647, %v691_v45  ;;  %vm699_vm5 = vweird.f32 %v691_v45 }
0x13d3   :  { %v706_v53 = vor.u32 1.1754944e-38, %v705_v49  ;;  %vm704_vm9 = vcmp.eq.f32.partialorder %v703_v51, 8.507059e+37 }
0x13d7   :  { %v824_v46 = vpop.eup %823 }
0x13d8   :  { %v695_v47 = vmul.f32 %v824_v46, %v691_v45  ;;  %vm700_vm0 = vweird.f32 %v824_v46 }
0x13d9   :  { %vm701_vm8 = vmor %vm699_vm5, %vm700_vm0 }
0x13da   :  { %v696_v48 = vsub.f32 1.0, %v695_v47 }
0x13dc   :  { %v697_v50 = vmul.f32 %v824_v46, %v696_v48 }
0x13de   :  { %v698_v52 = vadd.f32 %v824_v46, %v697_v50 }
0x13e0   :  { %v702_v54 = vsel %vm701_vm8, %v824_v46, %v698_v52 }
0x13e1   :  { %v707_v55 = vsel %vm704_vm9, %v706_v53, %v702_v54 }
0x13e2   :  { %v708_v56 = vmul.f32 %v822_v44, %v707_v55 }
0x13e4   :  { %709 = vst.msk [vmem:[#allocation9] sm:$0xff] %vm657_vm6, %v708_v56 }
0x13e5   :  { %720 = dma.vmem_to_hbm [thread:$0]  %s716_s6, 128, %s718_s14, [#allocation6]  }
0x13e6   :  { %901 = dma.done.wait [#allocation6], 128  }
0x13e7   :  { %902 = vsyncadd [#allocation6], 4294967168 }
0x13e8   :  { %725 = vsyncpa [#allocation5], 1 }
0x13e9   :  { %726 = vsyncpa [#allocation8], 1 }
0x13ea   :  { %727 = vsyncpa [#allocation6], 1 }

</bundles_post_ra>
